<compile_context>
chip_gen: v7x
topology: tpu7x:2x2x1
jax: 0.10.0
libtpu: 0.0.40
codegen_flags: <defaults>
</compile_context>

<pallas_src>
import functools

import jax
import jax.numpy as jnp
from jax.experimental import pallas as pl
from jax.experimental.pallas import tpu as pltpu

_SUBLANE = 8       # sublane granularity for batch tiles
_LANE = 128        # lane granularity (vreg / (8,128) constraint)
_MXU_LANE = 256    # v6e / v7x MXU width; hidden/out lane dims padded to this


def _round_up(x: int, m: int) -> int:
    return (x + m - 1) // m * m


def _cdiv(a: int, b: int) -> int:
    return (a + b - 1) // b


def mlp_kernel(x_ref, w1_ref, b1_ref, w2_ref, b2_ref, o_ref, acc_ref):
    """One (batch tile, hidden tile) step of fc1 -> ReLU -> fc2.

    Grid axis 0: batch tiles ("parallel").  Grid axis 1: hidden tiles
    ("arbitrary" reduction over fc2's contraction dim).  A f32 output
    accumulator lives in VMEM scratch; it is zeroed on the first hidden step
    and finalized (bias2 add + lane-dense store) on the last one.
    """
    h_idx = pl.program_id(1)

    @pl.when(h_idx == 0)
    def _init():
        acc_ref[...] = jnp.zeros_like(acc_ref)

    # fc1 (bf16 MXU, f32 accumulate) + bias + ReLU for this hidden tile.
    h = jnp.dot(x_ref[...], w1_ref[...], preferred_element_type=jnp.float32)
    h = jnp.maximum(h + b1_ref[...], 0.0)
    # fc2 partial product for this hidden tile (bf16 MXU, f32 accumulate).
    acc_ref[...] += jnp.dot(
        h.astype(jnp.bfloat16), w2_ref[...], preferred_element_type=jnp.float32
    )

    @pl.when(h_idx == pl.num_programs(1) - 1)
    def _finalize():
        o_ref[...] = (acc_ref[...] + b2_ref[...]).astype(o_ref.dtype)


def prepare_params(w1, b1, w2, b2, *, block_h=None, weight_vmem_budget=24 << 20):
    """Pad + bf16-cast the weights ONCE, outside the per-call hot path.

    w1: (in, hidden), b1: (hidden,), w2: (hidden, out), b2: (out,).
    Returns ((w1p, b1p, w2p, b2p), static) where `static` holds the tile size
    and true output width needed by mlp_forward.  Padded rows/columns are
    zero, so padded hidden lanes stay exactly zero through bias+ReLU and
    contribute nothing to fc2; padded output lanes are sliced off.
    """
    in_size, hidden = int(w1.shape[0]), int(w1.shape[1])
    out_size = int(w2.shape[1])

    in_p = _round_up(in_size, _LANE)           # contraction dim: lane-dense x
    out_p = _round_up(out_size, _MXU_LANE)     # lane-dense, MXU-width output

    # Hidden tile: keep double-buffered bf16 weight tiles (+ h intermediates)
    # inside a VMEM budget; tile the hidden axis when they would not fit.
    hidden_aligned = _round_up(hidden, _MXU_LANE)
    if block_h is None:
        per_col = 4 * (in_p + out_p) + 6 * 256   # bytes per hidden column (approx)
        block_h = max(
            _MXU_LANE, (weight_vmem_budget // per_col) // _MXU_LANE * _MXU_LANE
        )
    else:
        block_h = _round_up(int(block_h), _LANE)
    block_h = min(block_h, hidden_aligned)
    hidden_p = _round_up(hidden, block_h)      # divisible by block_h

    w1p = jnp.zeros((in_p, hidden_p), jnp.bfloat16)
    w1p = w1p.at[:in_size, :hidden].set(w1.astype(jnp.bfloat16))
    b1p = jnp.zeros((1, hidden_p), jnp.float32)
    b1p = b1p.at[:, :hidden].set(b1.reshape(1, -1).astype(jnp.float32))
    w2p = jnp.zeros((hidden_p, out_p), jnp.bfloat16)
    w2p = w2p.at[:hidden, :out_size].set(w2.astype(jnp.bfloat16))
    b2p = jnp.zeros((1, out_p), jnp.float32)
    b2p = b2p.at[:, :out_size].set(b2.reshape(1, -1).astype(jnp.float32))

    static = dict(out_size=out_size, block_h=block_h)
    return (w1p, b1p, w2p, b2p), static


@functools.partial(jax.jit, static_argnames=("out_size", "block_h", "block_b"))
def _mlp_forward_impl(x, w1p, b1p, w2p, b2p, *, out_size, block_h, block_b):
    B = x.shape[0]
    in_size = 1
    for d in x.shape[1:]:
        in_size *= int(d)
    in_p, hidden_p = w1p.shape
    out_p = w2p.shape[1]

    # Flatten to (B, in_size), stream in bf16, zero-pad contraction lanes.
    x2d = x.reshape(B, in_size).astype(jnp.bfloat16)
    if in_p != in_size:
        x2d = jnp.pad(x2d, ((0, 0), (0, in_p - in_size)))

    # Batch tiling: balanced tiles (waste < 8 rows each); force >= 2 tiles
    # whenever possible so the "parallel" axis can shard across v7x's 2 TCs.
    nb = max(1, _cdiv(B, block_b))
    if nb == 1 and B > _SUBLANE:
        nb = 2
    tb = _round_up(_cdiv(B, nb), _SUBLANE)
    B_pad = _round_up(B, tb)
    if B_pad != B:
        x2d = jnp.pad(x2d, ((0, B_pad - B), (0, 0)))
    grid = (B_pad // tb, hidden_p // block_h)

    # Explicit scoped-VMEM limit: streamed/resident tiles + ~50% headroom,
    # clamped to [8 MiB, 64 MiB] (v7x physical VMEM per TensorCore).
    est = (
        2 * tb * in_p * 2                       # x tiles, bf16, double-buffered
        + 2 * in_p * block_h * 2                # w1 tile, bf16, double-buffered
        + 2 * block_h * out_p * 2               # w2 tile, bf16, double-buffered
        + 2 * _SUBLANE * (block_h + out_p) * 4  # biases (sublane-padded)
        + 2 * tb * out_p * 4                    # out tiles, f32, double-buffered
        + tb * out_p * 4                        # f32 accumulator scratch
        + tb * block_h * 6                      # h intermediate (f32 + bf16 copy)
    )
    vmem_limit = int(min(max(est * 3 // 2, 8 << 20), 64 << 20))

    out = pl.pallas_call(
        mlp_kernel,
        out_shape=jax.ShapeDtypeStruct((B_pad, out_p), jnp.float32),
        grid_spec=pltpu.PrefetchScalarGridSpec(
            num_scalar_prefetch=0,
            grid=grid,
            in_specs=[
                # x: streamed per batch tile; constant across the hidden axis
                # so the pipeline DMAs it once per batch tile.
                pl.BlockSpec((tb, in_p), lambda i, h: (i, 0)),
                # fc1 weight / bias: tiled along hidden.
                pl.BlockSpec((in_p, block_h), lambda i, h: (0, h)),
                pl.BlockSpec((1, block_h), lambda i, h: (0, h)),
                # fc2 weight: tiled along its contraction (hidden) dim.
                pl.BlockSpec((block_h, out_p), lambda i, h: (h, 0)),
                # fc2 bias: constant, resident.
                pl.BlockSpec((1, out_p), lambda i, h: (0, 0)),
            ],
            out_specs=pl.BlockSpec((tb, out_p), lambda i, h: (i, 0)),
            scratch_shapes=[pltpu.VMEM((tb, out_p), jnp.float32)],
        ),
        compiler_params=pltpu.CompilerParams(
            dimension_semantics=("parallel", "arbitrary"),
            vmem_limit_bytes=vmem_limit,
        ),
    )(x2d, w1p, b1p, w2p, b2p)

    # Slice padded batch rows / output lanes back off.
    return out[:B, :out_size]


def mlp_forward(x, params, static, *, block_b=256):
    """x: (B, C, H, W) float32; params/static from prepare_params()."""
    w1p, b1p, w2p, b2p = params
    return _mlp_forward_impl(
        x, w1p, b1p, w2p, b2p,
        out_size=static["out_size"], block_h=static["block_h"], block_b=block_b,
    )


def init_params(key, in_size, hidden, out_size):
    # Deterministic init mimicking nn.Linear's uniform range (f32 master copy;
    # prepare_params makes the padded bf16 copies the kernel consumes).
    k1, k2, k3, k4 = jax.random.split(key, 4)
    lim1 = 1.0 / jnp.sqrt(in_size)
    lim2 = 1.0 / jnp.sqrt(hidden)
    w1 = jax.random.uniform(k1, (in_size, hidden), jnp.float32, -lim1, lim1)
    b1 = jax.random.uniform(k2, (hidden,), jnp.float32, -lim1, lim1)
    w2 = jax.random.uniform(k3, (hidden, out_size), jnp.float32, -lim2, lim2)
    b2 = jax.random.uniform(k4, (out_size,), jnp.float32, -lim2, lim2)
    return w1, b1, w2, b2


if __name__ == "__main__":
    key = jax.random.PRNGKey(0)

    # --- Test 1: small demo shapes (single batch tile, single hidden tile).
    # in_size = C*H*W = 1*8*8 = 64, hidden_size = 32 (explicit, instead of the
    # huge default in_size**2 + 1), out_size = 10, batch = 8.
    B, C, H, W = 8, 1, 8, 8
    in_size, hidden, out_size = C * H * W, 32, 10
    kx, kp = jax.random.split(key)
    x = jax.random.normal(kx, (B, C, H, W), jnp.float32)
    w1, b1, w2, b2 = init_params(kp, in_size, hidden, out_size)
    params, static = prepare_params(w1, b1, w2, b2)
    out = jax.block_until_ready(mlp_forward(x, params, static))
    ref = jnp.maximum(x.reshape(B, in_size) @ w1 + b1[None, :], 0.0) @ w2 + b2[None, :]
    assert out.shape == (B, out_size)
    assert jnp.allclose(out, ref, atol=2e-2, rtol=2e-2), float(jnp.max(jnp.abs(out - ref)))

    # --- Test 2: exercise the multi-tile path (3 batch tiles x 3 hidden
    # reduction steps, plus ragged batch / contraction padding).
    B2, in2, hid2, out2 = 40, 192, 384, 10
    kx2, kp2 = jax.random.split(kp)
    x2 = jax.random.normal(kx2, (B2, 1, 12, 16), jnp.float32)  # 12*16 = 192
    w1b, b1b, w2b, b2b = init_params(kp2, in2, hid2, out2)
    params2, static2 = prepare_params(w1b, b1b, w2b, b2b, block_h=128)
    out2_ = jax.block_until_ready(mlp_forward(x2, params2, static2, block_b=16))
    ref2 = (
        jnp.maximum(x2.reshape(B2, in2) @ w1b + b1b[None, :], 0.0) @ w2b + b2b[None, :]
    )
    assert out2_.shape == (B2, out2)
    assert jnp.allclose(out2_, ref2, atol=2e-2, rtol=2e-2), float(
        jnp.max(jnp.abs(out2_ - ref2))
    )

    print("KERNEL_OK")
</pallas_src>

<mosaic_0001>
module attributes {stable_mosaic.version = 11 : i64} {
  func.func @mlp_kernel(%arg0: i32, %arg1: i32, %arg2: memref<8x128xbf16, #tpu.memory_space<vmem>>, %arg3: memref<128x256xbf16, #tpu.memory_space<vmem>>, %arg4: memref<1x256xf32, #tpu.memory_space<vmem>>, %arg5: memref<256x256xbf16, #tpu.memory_space<vmem>>, %arg6: memref<1x256xf32, #tpu.memory_space<vmem>>, %arg7: memref<8x256xf32, #tpu.memory_space<vmem>>, %arg8: memref<8x256xf32, #tpu.memory_space<vmem>>) attributes {dimension_semantics = [#tpu.dimension_semantics<parallel>, #tpu.dimension_semantics<arbitrary>], iteration_bounds = array<i64: 1, 1>, scalar_prefetch = 0 : i64, scratch_operands = 1 : i64, tpu.core_type = #tpu.core_type<tc>, window_params = [{transform_indices = @transform_0, window_bounds = array<i64: 8, 128>}, {transform_indices = @transform_1, window_bounds = array<i64: 128, 256>}, {transform_indices = @transform_2, window_bounds = array<i64: 1, 256>}, {transform_indices = @transform_3, window_bounds = array<i64: 256, 256>}, {pipeline_mode = #tpu.pipeline_mode<synchronous>, transform_indices = @transform_4, window_bounds = array<i64: 1, 256>}, {transform_indices = @transform_5, window_bounds = array<i64: 8, 256>}]} {
    %c0_i32 = arith.constant 0 : i32
    %0 = arith.cmpi eq, %arg1, %c0_i32 : i32
    %1 = arith.extui %0 : i1 to i32
    %c0_i32_0 = arith.constant 0 : i32
    %2 = arith.cmpi ne, %1, %c0_i32_0 : i32
    scf.if %2 {
      %cst_16 = arith.constant 0.000000e+00 : f32
      %20 = vector.broadcast %cst_16 : f32 to vector<8x256xf32>
      %c0_17 = arith.constant 0 : index
      %c0_18 = arith.constant 0 : index
      %21 = vector.load %arg8[%c0_17, %c0_18] : memref<8x256xf32, #tpu.memory_space<vmem>>, vector<8x256xf32>
      tpu.vector_store %arg8[%c0_17, %c0_18], %20 {strides = array<i32>} : memref<8x256xf32, #tpu.memory_space<vmem>>, vector<8x256xf32>,
    } else {
    }
    %c0 = arith.constant 0 : index
    %c0_1 = arith.constant 0 : index
    %3 = vector.load %arg2[%c0, %c0_1] : memref<8x128xbf16, #tpu.memory_space<vmem>>, vector<8x128xbf16>
    %c0_2 = arith.constant 0 : index
    %c0_3 = arith.constant 0 : index
    %4 = vector.load %arg3[%c0_2, %c0_3] : memref<128x256xbf16, #tpu.memory_space<vmem>>, vector<128x256xbf16>
    %cst = arith.constant dense<0.000000e+00> : vector<8x256xf32>
    %5 = tpu.matmul %3, %4, %cst {dimension_numbers = #tpu.dot_dimension_numbers<[1], [0], [0], [1], [0, 0, 1, 1], [], []>} : vector<8x128xbf16>, vector<128x256xbf16>, vector<8x256xf32> -> vector<8x256xf32>
    %c0_4 = arith.constant 0 : index
    %c0_5 = arith.constant 0 : index
    %6 = vector.load %arg4[%c0_4, %c0_5] : memref<1x256xf32, #tpu.memory_space<vmem>>, vector<1x256xf32>
    %7 = vector.broadcast %6 : vector<1x256xf32> to vector<8x256xf32>
    %8 = arith.addf %5, %7 : vector<8x256xf32>
    %cst_6 = arith.constant 0.000000e+00 : f32
    %9 = vector.broadcast %cst_6 : f32 to vector<8x256xf32>
    %10 = arith.maximumf %8, %9 : vector<8x256xf32>
    %c0_7 = arith.constant 0 : index
    %c0_8 = arith.constant 0 : index
    %11 = vector.load %arg8[%c0_7, %c0_8] : memref<8x256xf32, #tpu.memory_space<vmem>>, vector<8x256xf32>
    %12 = arith.truncf %10 : vector<8x256xf32> to vector<8x256xbf16>
    %c0_9 = arith.constant 0 : index
    %c0_10 = arith.constant 0 : index
    %13 = vector.load %arg5[%c0_9, %c0_10] : memref<256x256xbf16, #tpu.memory_space<vmem>>, vector<256x256xbf16>
    %cst_11 = arith.constant dense<0.000000e+00> : vector<8x256xf32>
    %14 = tpu.matmul %12, %13, %cst_11 {dimension_numbers = #tpu.dot_dimension_numbers<[1], [0], [0], [1], [0, 0, 1, 1], [], []>} : vector<8x256xbf16>, vector<256x256xbf16>, vector<8x256xf32> -> vector<8x256xf32>
    %15 = arith.addf %11, %14 : vector<8x256xf32>
    %c0_12 = arith.constant 0 : index
    %c0_13 = arith.constant 0 : index
    %16 = vector.load %arg8[%c0_12, %c0_13] : memref<8x256xf32, #tpu.memory_space<vmem>>, vector<8x256xf32>
    tpu.vector_store %arg8[%c0_12, %c0_13], %15 {strides = array<i32>} : memref<8x256xf32, #tpu.memory_space<vmem>>, vector<8x256xf32>,
    %c0_i32_14 = arith.constant 0 : i32
    %17 = arith.cmpi eq, %arg1, %c0_i32_14 : i32
    %18 = arith.extui %17 : i1 to i32
    %c0_i32_15 = arith.constant 0 : i32
    %19 = arith.cmpi ne, %18, %c0_i32_15 : i32
    scf.if %19 {
      %c0_16 = arith.constant 0 : index
      %c0_17 = arith.constant 0 : index
      %20 = vector.load %arg8[%c0_16, %c0_17] : memref<8x256xf32, #tpu.memory_space<vmem>>, vector<8x256xf32>
      %c0_18 = arith.constant 0 : index
      %c0_19 = arith.constant 0 : index
      %21 = vector.load %arg6[%c0_18, %c0_19] : memref<1x256xf32, #tpu.memory_space<vmem>>, vector<1x256xf32>
      %22 = vector.broadcast %21 : vector<1x256xf32> to vector<8x256xf32>
      %23 = arith.addf %20, %22 : vector<8x256xf32>
      %c0_20 = arith.constant 0 : index
      %c0_21 = arith.constant 0 : index
      %24 = vector.load %arg7[%c0_20, %c0_21] : memref<8x256xf32, #tpu.memory_space<vmem>>, vector<8x256xf32>
      tpu.vector_store %arg7[%c0_20, %c0_21], %23 {strides = array<i32>} : memref<8x256xf32, #tpu.memory_space<vmem>>, vector<8x256xf32>,
    } else {
    }
    return
  }
  func.func @transform_0(%arg0: i32, %arg1: i32) -> (i32, i32) {
    %c0_i32 = arith.constant 0 : i32
    %c0_i32_0 = arith.constant 0 : i32
    return %arg0, %c0_i32 : i32, i32
  }
  func.func @transform_1(%arg0: i32, %arg1: i32) -> (i32, i32) {
    %c0_i32 = arith.constant 0 : i32
    %c0_i32_0 = arith.constant 0 : i32
    return %c0_i32, %arg1 : i32, i32
  }
  func.func @transform_2(%arg0: i32, %arg1: i32) -> (i32, i32) {
    %c0_i32 = arith.constant 0 : i32
    %c0_i32_0 = arith.constant 0 : i32
    return %c0_i32, %arg1 : i32, i32
  }
  func.func @transform_3(%arg0: i32, %arg1: i32) -> (i32, i32) {
    %c0_i32 = arith.constant 0 : i32
    %c0_i32_0 = arith.constant 0 : i32
    return %arg1, %c0_i32 : i32, i32
  }
  func.func @transform_4(%arg0: i32, %arg1: i32) -> (i32, i32) {
    %c0_i32 = arith.constant 0 : i32
    %c0_i32_0 = arith.constant 0 : i32
    %c0_i32_1 = arith.constant 0 : i32
    return %c0_i32, %c0_i32_0 : i32, i32
  }
  func.func @transform_5(%arg0: i32, %arg1: i32) -> (i32, i32) {
    %c0_i32 = arith.constant 0 : i32
    %c0_i32_0 = arith.constant 0 : i32
    return %arg0, %c0_i32 : i32, i32
  }
}

</mosaic_0001>

<bundles_post_ra>
// kernel: _mlp_forward_impl.1
= control target key start
LH: loop header
LB: loop body
LE: loop exit
PB: predicated region body
PF: predicated region fallthrough
CT: control target
= control target key end

     0   :  { %10 = vsyncpa [#allocation4], 0  ;;  %s608_s18 = smov [#allocation3]   ;;  %s717_s0 = inlined_call_operand.vmem [shape: bf16[8,128], index: 0, kind: input, shape index: {}]   ;;  %s718_s1 = inlined_call_operand.vmem [shape: bf16[128,256], index: 1, kind: input, shape index: {}]   ;;  %s719_s2 = inlined_call_operand.vmem [shape: f32[1,256], index: 2, kind: input, shape index: {}]   ;;  %s720_s3 = inlined_call_operand.hbm [shape: bf16[256,256], index: 3, kind: input, shape index: {}]   ;;  %s721_s4 = inlined_call_operand.vmem [shape: f32[1,256], index: 4, kind: input, shape index: {}]   ;;  %s722_s5 = inlined_call_operand.vmem [shape: f32[8,256], index: 5, kind: output, shape index: {}]  }
   0x1   :  { %s22_s19 = sshll.u32 %s608_s18, 4  ;;  %s584_s22 = scalar_lea.hbm %s720_s3, 4096  ;;  %s23_s19 = int_to_ptr.vmem [resolvable:$true] %s22_s19 }
   0x2   :  { %p585_p0 = scmp.ne.s32.totalorder %s720_s3, %s584_s22  ;;  %p588_p1 = scmp.lt.u32.totalorder %s584_s22, %s720_s3 }
   0x4   :  { %p590_p2 = pnand %p588_p1, %p585_p0 }
   0x6   :  { %593 = shalt.err (!%p590_p2)
}
   0x7   :  { %s594_s27 = scalar_lea.vmem %s23_s19, 4096  ;;  %p599_p4 = scmp.lt.s32.totalorder %s23_s19, %s23_s19 }
   0x8   :  { %p595_p3 = scmp.ne.s32.totalorder %s23_s19, %s594_s27  ;;  %p600_p5 = scmp.lt.s32.totalorder %s594_s27, %s594_s27 }
   0xa   :  { %p601_p6 = por %p600_p5, %p599_p4 }
   0xc   :  { %p602_p7 = pnand %p601_p6, %p595_p3 }
   0xe   :  { %605 = shalt.err (!%p602_p7)
}
   0xf   :  { %s609_s28 = smov 128   ;;  %s610_s29 = smov 8  }
  0x10   :  { %28 = dma.hbm_to_vmem [thread:$0]  %s720_s3, 4096, %s23_s19, [#allocation4], %s609_s28, %s609_s28, %s610_s29  }
  0x11   :  { %606 = dma.done.wait [#allocation4], 4096  }
  0x12   :  { %607 = vsyncadd [#allocation4], 4294963200  ;;  %v611_v0 = vmov 0   ;;  %v512_v1 = vld [vmem:[%s718_s1 + $0x4] ss:$8 sps:$4 sm:$0xff]   ;;  %v60_v50 = vlaneseq }
  0x13   :  { %182 = vmatprep.mubr.bf16.mxu0 %v611_v0  ;;  %v514_v2 = vld [vmem:[%s718_s1] ss:$8 sps:$4 sm:$0xff]   ;;  %150 = vmatprep.subr.bf16.mxu0 %v512_v1  ;;  %v515_v3 = vld [vmem:[%s718_s1 + $0x14] ss:$8 sps:$4 sm:$0xff]   ;;  %v517_v4 = vld [vmem:[%s718_s1 + $0x10] ss:$8 sps:$4 sm:$0xff]  }
  0x14   :  { %151 = vmatpush1.bf16.msra.mxu0 %v514_v2  ;;  %v518_v5 = vld [vmem:[%s718_s1 + $0x24] ss:$8 sps:$4 sm:$0xff]   ;;  %v520_v6 = vld [vmem:[%s718_s1 + $0x20] ss:$8 sps:$4 sm:$0xff]   ;;  %v521_v7 = vld [vmem:[%s718_s1 + $0x34] ss:$8 sps:$4 sm:$0xff]  }
  0x15   :  { %152 = vmatprep.subr.bf16.mxu0 %v515_v3  ;;  %v523_v8 = vld [vmem:[%s718_s1 + $0x30] ss:$8 sps:$4 sm:$0xff]   ;;  %v524_v9 = vld [vmem:[%s718_s1 + $0x44] ss:$8 sps:$4 sm:$0xff]   ;;  %v538_v11 = vld [vmem:[#allocation3] ss:$8 sps:$4 sm:$0xff]  }
  0x16   :  { %v536_v10 = vld [vmem:[#allocation3 + $0x4] ss:$8 sps:$4 sm:$0xff]   ;;  %v539_v12 = vld [vmem:[#allocation3 + $0x14] ss:$8 sps:$4 sm:$0xff]   ;;  %v526_v13 = vld [vmem:[%s718_s1 + $0x40] ss:$8 sps:$4 sm:$0xff]  }
  0x17   :  { %389 = vmatprep.subr.bf16.mxu1 %v536_v10  ;;  %v541_v14 = vld [vmem:[#allocation3 + $0x10] ss:$8 sps:$4 sm:$0xff]   ;;  %v542_v15 = vld [vmem:[#allocation3 + $0x24] ss:$8 sps:$4 sm:$0xff]   ;;  %v527_v16 = vld [vmem:[%s718_s1 + $0x54] ss:$8 sps:$4 sm:$0xff]  }
  0x18   :  { %153 = vmatpush1.bf16.msra.mxu0 %v517_v4  ;;  %390 = vmatpush1.bf16.msra.mxu1 %v538_v11  ;;  %v529_v17 = vld [vmem:[%s718_s1 + $0x50] ss:$8 sps:$4 sm:$0xff]   ;;  %v544_v18 = vld [vmem:[#allocation3 + $0x20] ss:$8 sps:$4 sm:$0xff]   ;;  %v545_v19 = vld [vmem:[#allocation3 + $0x34] ss:$8 sps:$4 sm:$0xff]  }
  0x19   :  { %154 = vmatprep.subr.bf16.mxu0 %v518_v5  ;;  %391 = vmatprep.subr.bf16.mxu1 %v539_v12  ;;  %v530_v20 = vld [vmem:[%s718_s1 + $0x64] ss:$8 sps:$4 sm:$0xff]   ;;  %v532_v21 = vld [vmem:[%s718_s1 + $0x60] ss:$8 sps:$4 sm:$0xff]   ;;  %v547_v22 = vld [vmem:[#allocation3 + $0x30] ss:$8 sps:$4 sm:$0xff]  }
  0x1a   :  { %v548_v23 = vld [vmem:[#allocation3 + $0x44] ss:$8 sps:$4 sm:$0xff]   ;;  %v533_v24 = vld [vmem:[%s718_s1 + $0x74] ss:$8 sps:$4 sm:$0xff]   ;;  %v535_v25 = vld [vmem:[%s718_s1 + $0x70] ss:$8 sps:$4 sm:$0xff]  }
  0x1b   :  { %v550_v26 = vld [vmem:[#allocation3 + $0x40] ss:$8 sps:$4 sm:$0xff]   ;;  %v551_v27 = vld [vmem:[#allocation3 + $0x54] ss:$8 sps:$4 sm:$0xff]   ;;  %v553_v28 = vld [vmem:[#allocation3 + $0x50] ss:$8 sps:$4 sm:$0xff]  }
  0x1c   :  { %155 = vmatpush1.bf16.msra.mxu0 %v520_v6  ;;  %392 = vmatpush1.bf16.msra.mxu1 %v541_v14  ;;  %v41_v29 = vld [vmem:[%s717_s0] sm:$0xf]  ;;  %v554_v30 = vld [vmem:[#allocation3 + $0x64] ss:$8 sps:$4 sm:$0xff]   ;;  %v557_v32 = vld [vmem:[#allocation3 + $0x74] ss:$8 sps:$4 sm:$0xff]  }
  0x1d   :  { %156 = vmatprep.subr.bf16.mxu0 %v521_v7  ;;  %393 = vmatprep.subr.bf16.mxu1 %v542_v15  ;;  %v556_v31 = vld [vmem:[#allocation3 + $0x60] ss:$8 sps:$4 sm:$0xff]   ;;  %v559_v33 = vld [vmem:[#allocation3 + $0x70] ss:$8 sps:$4 sm:$0xff]   ;;  %v560_v34 = vld [vmem:[#allocation3 + $0x84] ss:$8 sps:$4 sm:$0xff]  }
  0x1e   :  { %v562_v35 = vld [vmem:[#allocation3 + $0x80] ss:$8 sps:$4 sm:$0xff]   ;;  %v563_v36 = vld [vmem:[#allocation3 + $0x94] ss:$8 sps:$4 sm:$0xff]   ;;  %v565_v37 = vld [vmem:[#allocation3 + $0x90] ss:$8 sps:$4 sm:$0xff]  }
  0x1f   :  { %v566_v38 = vld [vmem:[#allocation3 + $0xa4] ss:$8 sps:$4 sm:$0xff]   ;;  %v568_v39 = vld [vmem:[#allocation3 + $0xa0] ss:$8 sps:$4 sm:$0xff]   ;;  %v569_v40 = vld [vmem:[#allocation3 + $0xb4] ss:$8 sps:$4 sm:$0xff]  }
  0x20   :  { %157 = vmatpush1.bf16.msra.mxu0 %v523_v8  ;;  %394 = vmatpush1.bf16.msra.mxu1 %v544_v18  ;;  %v571_v41 = vld [vmem:[#allocation3 + $0xb0] ss:$8 sps:$4 sm:$0xff]   ;;  %v572_v42 = vld [vmem:[#allocation3 + $0xc4] ss:$8 sps:$4 sm:$0xff]   ;;  %v574_v43 = vld [vmem:[#allocation3 + $0xc0] ss:$8 sps:$4 sm:$0xff]  }
  0x21   :  { %158 = vmatprep.subr.bf16.mxu0 %v524_v9  ;;  %395 = vmatprep.subr.bf16.mxu1 %v545_v19  ;;  %v575_v44 = vld [vmem:[#allocation3 + $0xd4] ss:$8 sps:$4 sm:$0xff]   ;;  %v577_v45 = vld [vmem:[#allocation3 + $0xd0] ss:$8 sps:$4 sm:$0xff]   ;;  %v578_v46 = vld [vmem:[#allocation3 + $0xe4] ss:$8 sps:$4 sm:$0xff]  }
  0x22   :  { %v580_v47 = vld [vmem:[#allocation3 + $0xe0] ss:$8 sps:$4 sm:$0xff]   ;;  %v581_v48 = vld [vmem:[#allocation3 + $0xf4] ss:$8 sps:$4 sm:$0xff]   ;;  %v583_v49 = vld [vmem:[#allocation3 + $0xf0] ss:$8 sps:$4 sm:$0xff]  }
  0x23   :  { %v61_v51 = vshrl.u32 %v60_v50, 7  ;;  %v58_v53 = vld [vmem:[%s719_s2] sm:$0x3] }
  0x24   :  { %159 = vmatpush1.bf16.msra.mxu0 %v526_v13  ;;  %396 = vmatpush1.bf16.msra.mxu1 %v547_v22  ;;  %v439_v3 = vld [vmem:[%s721_s4] sm:$0x3] }
  0x25   :  { %160 = vmatprep.subr.bf16.mxu0 %v527_v16  ;;  %397 = vmatprep.subr.bf16.mxu1 %v548_v23  ;;  %v62_v52 = vsub.s32 0, %v61_v51  ;;  %v66_v54 = vsub.s32 1, %v61_v51 }
  0x27   :  { %v63_v55 = vrot.slane %v58_v53, %v62_v52  ;;  %v67_v56 = vrot.slane %v58_v53, %v66_v54  ;;  %v444_v4 = vrot.slane %v439_v3, %v62_v52  ;;  %v448_v5 = vrot.slane %v439_v3, %v66_v54 }
  0x28   :  { %161 = vmatpush1.bf16.msra.mxu0 %v529_v17  ;;  %398 = vmatpush1.bf16.msra.mxu1 %v550_v26 }
  0x29   :  { %162 = vmatprep.subr.bf16.mxu0 %v530_v20  ;;  %399 = vmatprep.subr.bf16.mxu1 %v551_v27 }
  0x2c   :  { %163 = vmatpush1.bf16.msra.mxu0 %v532_v21  ;;  %400 = vmatpush1.bf16.msra.mxu1 %v553_v28 }
  0x2d   :  { %164 = vmatprep.subr.bf16.mxu0 %v533_v24  ;;  %401 = vmatprep.subr.bf16.mxu1 %v554_v30 }
  0x30   :  { %165 = vmatpush1.bf16.msra.mxu0 %v535_v25  ;;  %402 = vmatpush1.bf16.msra.mxu1 %v556_v31 }
  0x31   :  { %403 = vmatprep.subr.bf16.mxu1 %v557_v32 }
  0x33   :  { %183 = vmatmul.mubr.bf16.vlgmr.msra.gmra.mrb[0].mxu0 %v41_v29 }
  0x34   :  { %404 = vmatpush1.bf16.msra.mxu1 %v559_v33 }
  0x35   :  { %405 = vmatprep.subr.bf16.mxu1 %v560_v34 }
  0x38   :  { %406 = vmatpush1.bf16.msra.mxu1 %v562_v35 }
  0x39   :  { %407 = vmatprep.subr.bf16.mxu1 %v563_v36 }
  0x3c   :  { %408 = vmatpush1.bf16.msra.mxu1 %v565_v37 }
  0x3d   :  { %409 = vmatprep.subr.bf16.mxu1 %v566_v38 }
  0x40   :  { %410 = vmatpush1.bf16.msra.mxu1 %v568_v39 }
  0x41   :  { %411 = vmatprep.subr.bf16.mxu1 %v569_v40 }
  0x44   :  { %412 = vmatpush1.bf16.msra.mxu1 %v571_v41 }
  0x45   :  { %413 = vmatprep.subr.bf16.mxu1 %v572_v42 }
  0x48   :  { %414 = vmatpush1.bf16.msra.mxu1 %v574_v43 }
  0x49   :  { %415 = vmatprep.subr.bf16.mxu1 %v575_v44 }
  0x4c   :  { %416 = vmatpush1.bf16.msra.mxu1 %v577_v45 }
  0x4d   :  { %417 = vmatprep.subr.bf16.mxu1 %v578_v46 }
  0x50   :  { %418 = vmatpush1.bf16.msra.mxu1 %v580_v47 }
  0x51   :  { %419 = vmatprep.subr.bf16.mxu1 %v581_v48 }
  0x54   :  { %420 = vmatpush1.bf16.msra.mxu1 %v583_v49 }
 0x106   :  { %v184_v57 = vpop.f32.mrb[0].mxu0 }
 0x107   :  { %v185_v58 = vadd.f32 %v184_v57, %v63_v55  ;;  %v186_v59 = vpop.f32.mrb[1].mxu0 }
 0x108   :  { %v187_v60 = vadd.f32 %v186_v59, %v67_v56  ;;  %v188_v61 = vpop.f32.mrb[2].mxu0 }
 0x109   :  { %v191_v62 = vmax.f32 %v185_v58, 0.0  ;;  %v189_v63 = vpop.f32.mrb[3].mxu0 }
 0x10a   :  { %v192_v0 = vmax.f32 %v187_v60, 0.0 }
 0x10b   :  { %v195_v2 = vpack.c.bf16 %v191_v62, %v191_v62 }
 0x10c   :  { %v196_v1 = vpack.c.bf16 %v192_v0, %v192_v0 }
 0x10e   :  { %421 = vmatprep.mubr.bf16.mxu1 %v196_v1 }
 0x10f   :  { %422 = vmatmul.mubr.bf16.vlgmr.msra.gmra.mrb[0].mxu1 %v195_v2 }
 0x1e2   :  { %v423_v6 = vpop.f32.mrb[0].mxu1 }
 0x1e3   :  { %v451_v7 = vadd.f32 %v444_v4, %v423_v6  ;;  %v425_v8 = vpop.f32.mrb[1].mxu1 }
 0x1e4   :  { %v452_v9 = vadd.f32 %v448_v5, %v425_v8  ;;  %v427_v10 = vpop.f32.mrb[2].mxu1 }
 0x1e5   :  { %453 = vst [vmem:[%s722_s5] sm:$0xff] %v451_v7  ;;  %v428_v11 = vpop.f32.mrb[3].mxu1 }
 0x1e6   :  { %454 = vst [vmem:[%s722_s5 + $0x8] sm:$0xff] %v452_v9 }
 0x1e7   :  { %459 = vsyncpa [#allocation4], 1 }

</bundles_post_ra>
